<compile_context>
chip_gen: v7x
topology: tpu7x:2x2x1
jax: 0.10.0
libtpu: 0.0.40
codegen_flags: <defaults>
</compile_context>

<pallas_src>
import functools

import jax
import jax.numpy as jnp
from jax import lax
from jax.experimental import pallas as pl
from jax.experimental.pallas import tpu as pltpu


def _ce_kernel(logits_ref, labels_ref, out_ref, *, n_rows: int, row_tile: int,
               ignore_index: int, eps: float):
    x = logits_ref[...].astype(jnp.float32)            # (TN, C)
    y = labels_ref[...]                                 # (TN, 1) int32
    tn, C = x.shape

    # Row validity: in-bounds (handles the partial last block without any
    # wrapper-side padding copy) AND label != ignore_index.  Out-of-bounds
    # rows may hold unspecified data; jnp.where on the final per-row loss
    # makes any inf/NaN they produce irrelevant.
    row0 = pl.program_id(0) * row_tile
    ridx = row0 + lax.broadcasted_iota(jnp.int32, (tn, 1), 0)
    valid = (ridx < n_rows) & (y != ignore_index)        # (TN, 1) bool

    # stable log-sum-exp per row
    m = jnp.max(x, axis=-1, keepdims=True)               # (TN, 1)
    lse = m + jnp.log(jnp.sum(jnp.exp(x - m), axis=-1, keepdims=True))

    # gather x[row, y[row]] via one-hot compare; iota built as (1, C) and
    # broadcast against y (TN, 1) -> (TN, C) (no full-block iota per step).
    col = lax.broadcasted_iota(jnp.int32, (1, C), 1)
    x_y = jnp.sum(jnp.where(col == y, x, 0.0), axis=-1, keepdims=True)

    # smoothed CE:  (1-eps) * (lse - x_y) + eps * (lse - mean(x))
    per_row = (1.0 - eps) * (lse - x_y)                   # (TN, 1)
    if eps != 0.0:                                        # static branch
        mean_x = jnp.sum(x, axis=-1, keepdims=True) * (1.0 / C)
        per_row = per_row + eps * (lse - mean_x)

    per_row = jnp.where(valid, per_row, 0.0)

    s = jnp.sum(per_row)                                  # tile partial loss
    c = jnp.sum(valid.astype(jnp.float32))                # tile valid count

    # lane-dense (8, 128) partial slab: [0,0] = sum, [0,1] = count, rest 0.
    sub = lax.broadcasted_iota(jnp.int32, (8, 128), 0)
    lane = lax.broadcasted_iota(jnp.int32, (8, 128), 1)
    out_ref[...] = jnp.where((sub == 0) & (lane == 0), s,
                             jnp.where((sub == 0) & (lane == 1), c, 0.0))


def _pick_row_tile(n_rows: int, n_classes: int, itemsize: int,
                   target_block_bytes: int = 4 << 20,
                   max_rows: int = 1024) -> int:
    """Rows per block targeting ~4 MiB of logits (multiple of 8)."""
    bytes_per_row = max(1, n_classes * itemsize)
    rows = target_block_bytes // bytes_per_row
    rows = max(8, (rows // 8) * 8)
    rows = min(rows, max_rows)
    n_pad8 = max(8, -(-n_rows // 8) * 8)
    rows = min(rows, n_pad8)
    return int(rows)


def cross_entropy_loss(logits: jax.Array, labels: jax.Array, *,
                       ignore_index: int, label_smoothing_epsilon: float,
                       row_tile: int | None = None,
                       vmem_limit_bytes: int = 32 * 1024 * 1024) -> jax.Array:
    """logits: (..., C) float (f32 or bf16), labels: (...) int. Scalar f32 loss."""
    C = logits.shape[-1]
    x = logits.reshape(-1, C)                     # (N, C), class dim last
    y = labels.reshape(-1, 1).astype(jnp.int32)   # (N, 1)
    N = x.shape[0]

    if row_tile is None:
        row_tile = _pick_row_tile(N, C, x.dtype.itemsize)
    assert row_tile % 8 == 0 and row_tile > 0

    # Partial last block (N % row_tile != 0) is masked in-kernel; no padding
    # copy of the logits is ever made.
    num_tiles = pl.cdiv(N, row_tile)

    kernel = functools.partial(_ce_kernel,
                               n_rows=N,
                               row_tile=row_tile,
                               ignore_index=int(ignore_index),
                               eps=float(label_smoothing_epsilon))

    partials = pl.pallas_call(
        kernel,
        out_shape=jax.ShapeDtypeStruct((num_tiles * 8, 128), jnp.float32),
        grid_spec=pltpu.PrefetchScalarGridSpec(
            num_scalar_prefetch=0,
            grid=(num_tiles,),
            in_specs=[
                pl.BlockSpec((row_tile, C), lambda i: (i, 0)),
                pl.BlockSpec((row_tile, 1), lambda i: (i, 0)),
            ],
            out_specs=pl.BlockSpec((8, 128), lambda i: (i, 0)),
        ),
        compiler_params=pltpu.CompilerParams(
            dimension_semantics=("parallel",),
            vmem_limit_bytes=vmem_limit_bytes),
    )(x, y)

    totals = jnp.sum(partials, axis=0)            # (128,): [sum, count, 0...]
    # mean over non-ignored elements (PyTorch 'mean' reduction semantics)
    return (totals[0] / totals[1]).astype(jnp.float32)


def _reference(logits, labels, ignore_index, eps):
    """Pure-JAX reference replicating torch.nn.CrossEntropyLoss."""
    C = logits.shape[-1]
    x = logits.reshape(-1, C).astype(jnp.float32)
    y = labels.reshape(-1)
    logp = jax.nn.log_softmax(x, axis=-1)
    nll = -jnp.take_along_axis(logp, y[:, None], axis=-1)[:, 0]
    smooth = -jnp.mean(logp, axis=-1)
    per = (1.0 - eps) * nll + eps * smooth
    valid = y != ignore_index
    per = jnp.where(valid, per, 0.0)
    return jnp.sum(per) / jnp.sum(valid.astype(jnp.float32))


if __name__ == "__main__":
    IGNORE_INDEX = -100
    LABEL_SMOOTHING = 0.1

    key = jax.random.PRNGKey(0)
    k1, k2, k3 = jax.random.split(key, 3)

    # Small shapes consistent with the module: (B, T, V) logits, (B, T) labels.
    B, T, V = 2, 8, 32
    logits = jax.random.normal(k1, (B, T, V), dtype=jnp.float32)
    labels = jax.random.randint(k2, (B, T), 0, V, dtype=jnp.int32)
    ignore_mask = jax.random.bernoulli(k3, 0.25, (B, T))
    labels = jnp.where(ignore_mask, jnp.int32(IGNORE_INDEX), labels)

    ref = _reference(logits, labels, IGNORE_INDEX, LABEL_SMOOTHING)

    # 1) default auto row tile (single tile at this size)
    loss = cross_entropy_loss(logits, labels, ignore_index=IGNORE_INDEX,
                              label_smoothing_epsilon=LABEL_SMOOTHING)
    loss = jax.block_until_ready(loss)
    assert jnp.allclose(loss, ref, atol=1e-5, rtol=1e-5), (loss, ref)

    # 2) multi-tile path + wrapper-side partial reduction (N % row_tile == 0)
    loss_mt = cross_entropy_loss(logits, labels, ignore_index=IGNORE_INDEX,
                                 label_smoothing_epsilon=LABEL_SMOOTHING,
                                 row_tile=8)
    loss_mt = jax.block_until_ready(loss_mt)
    assert jnp.allclose(loss_mt, ref, atol=1e-5, rtol=1e-5), (loss_mt, ref)

    # 3) partial-last-block path: N = 14 rows, row_tile = 8 -> second block
    #    has 2 out-of-bounds rows masked in-kernel (no padding copy).
    B2, T2 = 2, 7
    logits2 = jax.random.normal(k1, (B2, T2, V), dtype=jnp.float32)
    labels2 = jax.random.randint(k2, (B2, T2), 0, V, dtype=jnp.int32)
    ref2 = _reference(logits2, labels2, IGNORE_INDEX, LABEL_SMOOTHING)
    loss_pb = cross_entropy_loss(logits2, labels2, ignore_index=IGNORE_INDEX,
                                 label_smoothing_epsilon=LABEL_SMOOTHING,
                                 row_tile=8)
    loss_pb = jax.block_until_ready(loss_pb)
    assert jnp.allclose(loss_pb, ref2, atol=1e-5, rtol=1e-5), (loss_pb, ref2)

    # 4) bf16 logits path (halved HBM traffic; compute is still f32 in-kernel)
    logits_bf = logits.astype(jnp.bfloat16)
    ref_bf = _reference(logits_bf, labels, IGNORE_INDEX, LABEL_SMOOTHING)
    loss_bf = cross_entropy_loss(logits_bf, labels, ignore_index=IGNORE_INDEX,
                                 label_smoothing_epsilon=LABEL_SMOOTHING)
    loss_bf = jax.block_until_ready(loss_bf)
    assert jnp.allclose(loss_bf, ref_bf, atol=1e-5, rtol=1e-5), (loss_bf, ref_bf)

    # 5) no label smoothing (static eps == 0 branch skips mean-logit reduction)
    ref0 = _reference(logits, labels, IGNORE_INDEX, 0.0)
    loss0 = cross_entropy_loss(logits, labels, ignore_index=IGNORE_INDEX,
                               label_smoothing_epsilon=0.0)
    loss0 = jax.block_until_ready(loss0)
    assert jnp.allclose(loss0, ref0, atol=1e-5, rtol=1e-5), (loss0, ref0)

    print("KERNEL_OK")
</pallas_src>

<mosaic_0001>
module attributes {stable_mosaic.version = 11 : i64} {
  func.func @_ce_kernel(%arg0: i32, %arg1: memref<16x32xf32, #tpu.memory_space<vmem>>, %arg2: memref<16x1xi32, #tpu.memory_space<vmem>>, %arg3: memref<8x128xf32, #tpu.memory_space<vmem>>) attributes {dimension_semantics = [#tpu.dimension_semantics<parallel>], iteration_bounds = array<i64: 1>, scalar_prefetch = 0 : i64, scratch_operands = 0 : i64, tpu.core_type = #tpu.core_type<tc>, window_params = [{transform_indices = @transform_0, window_bounds = array<i64: 16, 32>}, {transform_indices = @transform_1, window_bounds = array<i64: 16, 1>}, {transform_indices = @transform_2, window_bounds = array<i64: 8, 128>}]} {
    %c0 = arith.constant 0 : index
    %c0_0 = arith.constant 0 : index
    %0 = vector.load %arg1[%c0, %c0_0] : memref<16x32xf32, #tpu.memory_space<vmem>>, vector<16x32xf32>
    %c0_1 = arith.constant 0 : index
    %c0_2 = arith.constant 0 : index
    %1 = vector.load %arg2[%c0_1, %c0_2] : memref<16x1xi32, #tpu.memory_space<vmem>>, vector<16x1xi32>
    %c16_i32 = arith.constant 16 : i32
    %2 = arith.muli %arg0, %c16_i32 : i32
    %3 = tpu.iota {dimensions = array<i32: 0>} : vector<16x1xi32>
    %4 = vector.broadcast %2 : i32 to vector<16x1xi32>
    %5 = arith.addi %4, %3 : vector<16x1xi32>
    %c16_i32_3 = arith.constant 16 : i32
    %6 = vector.broadcast %c16_i32_3 : i32 to vector<16x1xi32>
    %7 = arith.cmpi slt, %5, %6 : vector<16x1xi32>
    %c-100_i32 = arith.constant -100 : i32
    %8 = vector.broadcast %c-100_i32 : i32 to vector<16x1xi32>
    %9 = arith.cmpi ne, %1, %8 : vector<16x1xi32>
    %10 = arith.andi %7, %9 : vector<16x1xi1>
    %cst = arith.constant dense<0xFF800000> : vector<16xf32>
    %11 = vector.multi_reduction <maximumf>, %0, %cst [1] : vector<16x32xf32> to vector<16xf32>
    %12 = vector.shape_cast %11 : vector<16xf32> to vector<16x1xf32>
    %13 = vector.broadcast %12 : vector<16x1xf32> to vector<16x32xf32>
    %14 = arith.subf %0, %13 : vector<16x32xf32>
    %15 = math.exp %14 : vector<16x32xf32>
    %cst_4 = arith.constant dense<0.000000e+00> : vector<16xf32>
    %16 = vector.multi_reduction <add>, %15, %cst_4 [1] : vector<16x32xf32> to vector<16xf32>
    %17 = vector.shape_cast %16 : vector<16xf32> to vector<16x1xf32>
    %18 = math.log %17 : vector<16x1xf32>
    %19 = arith.addf %12, %18 : vector<16x1xf32>
    %20 = tpu.iota {dimensions = array<i32: 1>} : vector<1x32xi32>
    %21 = vector.broadcast %20 : vector<1x32xi32> to vector<16x32xi32>
    %22 = vector.broadcast %1 : vector<16x1xi32> to vector<16x32xi32>
    %23 = arith.cmpi eq, %21, %22 : vector<16x32xi32>
    %cst_5 = arith.constant 0.000000e+00 : f32
    %24 = vector.broadcast %cst_5 : f32 to vector<16x32xf32>
    %25 = arith.select %23, %0, %24 : vector<16x32xi1>, vector<16x32xf32>
    %cst_6 = arith.constant dense<0.000000e+00> : vector<16xf32>
    %26 = vector.multi_reduction <add>, %25, %cst_6 [1] : vector<16x32xf32> to vector<16xf32>
    %27 = vector.shape_cast %26 : vector<16xf32> to vector<16x1xf32>
    %28 = arith.subf %19, %27 : vector<16x1xf32>
    %cst_7 = arith.constant 0.899999976 : f32
    %29 = vector.broadcast %cst_7 : f32 to vector<16x1xf32>
    %30 = arith.mulf %29, %28 : vector<16x1xf32>
    %cst_8 = arith.constant dense<0.000000e+00> : vector<16xf32>
    %31 = vector.multi_reduction <add>, %0, %cst_8 [1] : vector<16x32xf32> to vector<16xf32>
    %32 = vector.shape_cast %31 : vector<16xf32> to vector<16x1xf32>
    %cst_9 = arith.constant 3.125000e-02 : f32
    %33 = vector.broadcast %cst_9 : f32 to vector<16x1xf32>
    %34 = arith.mulf %32, %33 : vector<16x1xf32>
    %35 = arith.subf %19, %34 : vector<16x1xf32>
    %cst_10 = arith.constant 1.000000e-01 : f32
    %36 = vector.broadcast %cst_10 : f32 to vector<16x1xf32>
    %37 = arith.mulf %36, %35 : vector<16x1xf32>
    %38 = arith.addf %30, %37 : vector<16x1xf32>
    %cst_11 = arith.constant 0.000000e+00 : f32
    %39 = vector.broadcast %cst_11 : f32 to vector<16x1xf32>
    %40 = arith.select %10, %38, %39 : vector<16x1xi1>, vector<16x1xf32>
    %41 = vector.shape_cast %40 : vector<16x1xf32> to vector<1x16x1xf32>
    %cst_12 = arith.constant dense<0.000000e+00> : vector<1xf32>
    %42 = vector.multi_reduction <add>, %41, %cst_12 [1, 2] : vector<1x16x1xf32> to vector<1xf32>
    %43 = vector.shape_cast %42 : vector<1xf32> to vector<1x1x1xf32>
    %44 = vector.extract %43[0, 0, 0] : f32 from vector<1x1x1xf32>
    %45 = arith.extui %10 : vector<16x1xi1> to vector<16x1xi32>
    %46 = arith.sitofp %45 : vector<16x1xi32> to vector<16x1xf32>
    %47 = vector.shape_cast %46 : vector<16x1xf32> to vector<1x16x1xf32>
    %cst_13 = arith.constant dense<0.000000e+00> : vector<1xf32>
    %48 = vector.multi_reduction <add>, %47, %cst_13 [1, 2] : vector<1x16x1xf32> to vector<1xf32>
    %49 = vector.shape_cast %48 : vector<1xf32> to vector<1x1x1xf32>
    %50 = vector.extract %49[0, 0, 0] : f32 from vector<1x1x1xf32>
    %51 = tpu.iota {dimensions = array<i32: 0>} : vector<8x128xi32>
    %52 = tpu.iota {dimensions = array<i32: 1>} : vector<8x128xi32>
    %c0_i32 = arith.constant 0 : i32
    %53 = vector.broadcast %c0_i32 : i32 to vector<8x128xi32>
    %54 = arith.cmpi eq, %51, %53 : vector<8x128xi32>
    %c0_i32_14 = arith.constant 0 : i32
    %55 = vector.broadcast %c0_i32_14 : i32 to vector<8x128xi32>
    %56 = arith.cmpi eq, %52, %55 : vector<8x128xi32>
    %57 = arith.andi %54, %56 : vector<8x128xi1>
    %c0_i32_15 = arith.constant 0 : i32
    %58 = vector.broadcast %c0_i32_15 : i32 to vector<8x128xi32>
    %59 = arith.cmpi eq, %51, %58 : vector<8x128xi32>
    %c1_i32 = arith.constant 1 : i32
    %60 = vector.broadcast %c1_i32 : i32 to vector<8x128xi32>
    %61 = arith.cmpi eq, %52, %60 : vector<8x128xi32>
    %62 = arith.andi %59, %61 : vector<8x128xi1>
    %cst_16 = arith.constant 0.000000e+00 : f32
    %63 = vector.broadcast %50 : f32 to vector<8x128xf32>
    %64 = vector.broadcast %cst_16 : f32 to vector<8x128xf32>
    %65 = arith.select %62, %63, %64 : vector<8x128xi1>, vector<8x128xf32>
    %66 = vector.broadcast %44 : f32 to vector<8x128xf32>
    %67 = arith.select %57, %66, %65 : vector<8x128xi1>, vector<8x128xf32>
    %c0_17 = arith.constant 0 : index
    %c0_18 = arith.constant 0 : index
    %68 = vector.load %arg3[%c0_17, %c0_18] : memref<8x128xf32, #tpu.memory_space<vmem>>, vector<8x128xf32>
    tpu.vector_store %arg3[%c0_17, %c0_18], %67 {strides = array<i32>} : memref<8x128xf32, #tpu.memory_space<vmem>>, vector<8x128xf32>,
    return
  }
  func.func @transform_0(%arg0: i32) -> (i32, i32) {
    %c0_i32 = arith.constant 0 : i32
    %c0_i32_0 = arith.constant 0 : i32
    return %arg0, %c0_i32 : i32, i32
  }
  func.func @transform_1(%arg0: i32) -> (i32, i32) {
    %c0_i32 = arith.constant 0 : i32
    %c0_i32_0 = arith.constant 0 : i32
    return %arg0, %c0_i32 : i32, i32
  }
  func.func @transform_2(%arg0: i32) -> (i32, i32) {
    %c0_i32 = arith.constant 0 : i32
    %c0_i32_0 = arith.constant 0 : i32
    return %arg0, %c0_i32 : i32, i32
  }
}

</mosaic_0001>

<bundles_post_ra>
// kernel: tpu_custom_call.1
= control target key start
LH: loop header
LB: loop body
LE: loop exit
PB: predicated region body
PF: predicated region fallthrough
CT: control target
= control target key end

     0   :  { %vm29_vm0 = vcmask 261120   ;;  %v188_v4 = vmov 0   ;;  %s266_s0 = inlined_call_operand.vmem [shape: f32[16,32], index: 0, kind: input, shape index: {}]   ;;  %s267_s1 = inlined_call_operand.vmem [shape: s32[16,1], index: 1, kind: input, shape index: {}]   ;;  %s268_s2 = inlined_call_operand.hbm [shape: f32[8,128], index: 2, kind: output, shape index: {}]  }
   0x1   :  { %v12_v0 = vld [vmem:[%s266_s0] sm:$0xff]  ;;  %v13_v1 = vld [vmem:[%s266_s0 + $0x8] sm:$0xff]  ;;  %154 = vset.pattern.permute.xlu1 %v188_v4  ;;  %155 = vset.pattern.permute.xlu0 %v188_v4 }
   0x2   :  { %v215_v2 = vld [vmem:[%s267_s1] sm:$0xff]  ;;  %v30_v3 = vsel %vm29_vm0, %v12_v0, -inf }
   0x3   :  { %7 = vsyncpa [#allocation3], 0  ;;  %31 = vmax.xlane.f32.xlu0 %v30_v3  ;;  %57 = vperm.xlu1 %154, %v215_v2   ;;  %v33_v5 = vsel %vm29_vm0, %v13_v1, -inf  ;;  %v223_v6 = vld [vmem:[%s267_s1 + $0x8] sm:$0xff]  ;;  %v17_v13 = vlaneseq  ;;  %v76_v18 = vsel %vm29_vm0, %v12_v0, 0.0  ;;  %v79_v22 = vsel %vm29_vm0, %v13_v1, 0.0 }
   0x4   :  { %vm25_vm3 = vcmp.ne.s32.totalorder %v215_v2, 4294967196  ;;  %v189_v27 = vmov 0.0   ;;  %vm26_vm4 = vcmp.ne.s32.totalorder %v223_v6, 4294967196  ;;  %vm92_vm5 = vcmask 7168   ;;  %s190_s1 = smov [#allocation2]  }
   0x5   :  { %v228_v17 = vand.u32 127, %v17_v13  ;;  %v145_v28 = vsel %vm25_vm3, 1.0, %v189_v27  ;;  %v146_v29 = vsel %vm26_vm4, 1.0, %v189_v27  ;;  %s137_s17 = sshll.u32 %s190_s1, 4  ;;  %s138_s17 = int_to_ptr.vmem [resolvable:$true] %s137_s17 }
   0x6   :  { %v109_v30 = vsel %vm92_vm5, %v145_v28, 0.0  ;;  %v110_v31 = vsel %vm92_vm5, %v146_v29, 0.0  ;;  %s164_s19 = scalar_lea.vmem %s138_s17, 128  ;;  %p169_p1 = scmp.lt.s32.totalorder %s138_s17, %s138_s17 }
   0x7   :  { %34 = vmax.xlane.f32.xlu0 %v33_v5  ;;  %60 = vperm.xlu1 %154, %v223_v6   ;;  %v111_v32 = vadd.f32 %v110_v31, %v109_v30  ;;  %vm124_vm7 = vcmp.eq.s32.totalorder %v228_v17, 1  ;;  %vm122_vm8 = vcmp.eq.s32.totalorder %v228_v17, 0  ;;  %p165_p0 = scmp.ne.s32.totalorder %s138_s17, %s164_s19  ;;  %p170_p2 = scmp.lt.s32.totalorder %s164_s19, %s164_s19 }
   0x9   :  { %p171_p3 = por %p170_p2, %p169_p1 }
   0xb   :  { %p172_p4 = pnand %p171_p3, %p165_p0 }
  0x82   :  { %v58_v15 = vpop.permute.xlu1 %57 }
  0x83   :  { %vm62_vm1 = vcmp.eq.s32.totalorder %v228_v17, %v58_v15 }
  0x84   :  { %v64_v23 = vsel %vm62_vm1, %v12_v0, 0.0 }
  0x85   :  { %v66_v24 = vsel %vm29_vm0, %v64_v23, 0.0 }
  0x86   :  { %v61_v21 = vpop.permute.xlu1 %60 }
  0x87   :  { %vm63_vm2 = vcmp.eq.s32.totalorder %v228_v17, %v61_v21 }
  0x88   :  { %v65_v25 = vsel %vm63_vm2, %v13_v1, 0.0 }
  0x89   :  { %v69_v26 = vsel %vm29_vm0, %v65_v25, 0.0 }
  0x90   :  { %v32_v7 = vpop.xlane.xlu0 %31 }
  0x91   :  { %v36_v8 = vsub.f32 %v12_v0, %v32_v7 }
  0x93   :  { %v38_v9 = vmul.f32 1.442695, %v36_v8 }
  0x94   :  { %v35_v10 = vpop.xlane.xlu0 %34 }
  0x95   :  { %156 = vpow2.f32 %v38_v9  ;;  %v37_v11 = vsub.f32 %v13_v1, %v35_v10 }
  0x97   :  { %v40_v12 = vmul.f32 1.442695, %v37_v11 }
  0x99   :  { %158 = vpow2.f32 %v40_v12  ;;  %v18_v12 = vshrl.u32 %v17_v13, 7 }
  0x9b   :  { %vm121_vm6 = vcmp.eq.s32.totalorder %v18_v12, 0 }
  0x9c   :  { %vm125_vm9 = vmand %vm121_vm6, %vm124_vm7 }
  0x9d   :  { %vm123_vm10 = vmand %vm121_vm6, %vm122_vm8 }
  0x9f   :  { %v157_v14 = vpop.eup %156 }
  0xa0   :  { %v42_v16 = vsel %vm29_vm0, %v157_v14, 0.0 }
  0xa1   :  { %43 = vadd.xlane.f32.xlu0 %v42_v16 }
  0xa3   :  { %v159_v19 = vpop.eup %158 }
  0xa4   :  { %v45_v20 = vsel %vm29_vm0, %v159_v19, 0.0 }
  0xa5   :  { %77 = vadd.xlane.f32.xlu0 %v76_v18  ;;  %46 = vadd.xlane.f32.xlu1 %v45_v20 }
  0xa9   :  { %80 = vadd.xlane.f32.xlu0 %v79_v22 }
  0xad   :  { %67 = vadd.xlane.f32.xlu0 %v66_v24 }
  0xb1   :  { %70 = vadd.xlane.f32.xlu0 %v69_v26 }
 0x12e   :  { %v44_v33 = vpop.xlane.xlu0 %43 }
 0x12f   :  { %160 = vlog2.f32 %v44_v33 }
 0x132   :  { %v47_v34 = vpop.xlane.xlu1 %46  ;;  %v78_v35 = vpop.xlane.xlu0 %77 }
 0x133   :  { %162 = vlog2.f32 %v47_v34  ;;  %v82_v41 = vmul.f32 0.03125, %v78_v35 }
 0x136   :  { %v81_v36 = vpop.xlane.xlu0 %80 }
 0x137   :  { %v83_v48 = vmul.f32 0.03125, %v81_v36 }
 0x139   :  { %v161_v37 = vpop.eup %160 }
 0x13a   :  { %v49_v38 = vmul.f32 0.6931472, %v161_v37  ;;  %v68_v39 = vpop.xlane.xlu0 %67 }
 0x13c   :  { %v52_v40 = vadd.f32 %v49_v38, %v32_v7 }
 0x13d   :  { %v163_v42 = vpop.eup %162 }
 0x13e   :  { %v51_v43 = vmul.f32 0.6931472, %v163_v42  ;;  %v84_v44 = vsub.f32 %v52_v40, %v82_v41  ;;  %v72_v45 = vsub.f32 %v52_v40, %v68_v39  ;;  %v71_v50 = vpop.xlane.xlu0 %70 }
 0x140   :  { %v86_v46 = vmul.f32 0.1, %v84_v44  ;;  %v53_v47 = vadd.f32 %v51_v43, %v35_v10  ;;  %v74_v49 = vmul.f32 0.9, %v72_v45 }
 0x142   :  { %v85_v51 = vsub.f32 %v53_v47, %v83_v48  ;;  %v88_v52 = vadd.f32 %v86_v46, %v74_v49  ;;  %v73_v53 = vsub.f32 %v53_v47, %v71_v50 }
 0x144   :  { %v87_v54 = vmul.f32 0.1, %v85_v51  ;;  %v75_v55 = vmul.f32 0.9, %v73_v53  ;;  %v90_v57 = vsel %vm25_vm3, %v88_v52, 0.0 }
 0x145   :  { %v93_v59 = vsel %vm92_vm5, %v90_v57, 0.0 }
 0x146   :  { %v89_v56 = vadd.f32 %v87_v54, %v75_v55 }
 0x148   :  { %v91_v58 = vsel %vm26_vm4, %v89_v56, 0.0 }
 0x149   :  { %v94_v60 = vsel %vm92_vm5, %v91_v58, 0.0 }
 0x14a   :  { %v95_v61 = vadd.f32 %v94_v60, %v93_v59 }
 0x14c   :  { %96 = vadd.xlane.f32.xlu0 %v95_v61 }
 0x150   :  { %112 = vadd.xlane.f32.xlu0 %v111_v32 }
 0x1d9   :  { %v97_v62 = vpop.xlane.xlu0 %96 }
 0x1da   :  { %v98_v63 = vrot.slane %v97_v62, 4 }
 0x1dc   :  { %v99_v0 = vadd.f32 %v98_v63, %v97_v62 }
 0x1dd   :  { %v113_v1 = vpop.xlane.xlu0 %112 }
 0x1de   :  { %v100_v3 = vrot.slane %v99_v0, 2  ;;  %v114_v4 = vrot.slane %v113_v1, 4 }
 0x1e0   :  { %v115_v5 = vadd.f32 %v114_v4, %v113_v1  ;;  %v101_v7 = vadd.f32 %v100_v3, %v99_v0 }
 0x1e2   :  { %v116_v2 = vrot.slane %v115_v5, 2  ;;  %v102_v8 = vrot.slane %v101_v7, 1 }
 0x1e4   :  { %v117_v9 = vadd.f32 %v116_v2, %v115_v5  ;;  %v103_v6 = vadd.f32 %v102_v8, %v101_v7 }
 0x1e6   :  { %147 = vpush %v103_v6  ;;  %v118_v10 = vrot.slane %v117_v9, 1 }
 0x1e8   :  { %v119_v11 = vadd.f32 %v118_v10, %v117_v9 }
 0x1ea   :  { %149 = vpush %v119_v11 }
 0x217   :  { %s148_s0 = spop %147 }
 0x218   :  { %v128_v15 = vstv %s148_s0 }
 0x21b   :  { %s150_s18 = spop %149 }
 0x21c   :  { %v126_v14 = vstv %s150_s18 }
 0x21d   :  { %v127_v16 = vsel %vm125_vm9, %v126_v14, 0.0 }
 0x21e   :  { %v129_v18 = vsel %vm123_vm10, %v128_v15, %v127_v16 }
 0x21f   :  { %130 = vst [vmem:[#allocation2] sm:$0xff] %v129_v18 }
 0x220   :  { %175 = shalt.err (!%p172_p4)
}
 0x221   :  { %s176_s22 = scalar_lea.hbm %s268_s2, 128 }
 0x222   :  { %p177_p5 = scmp.ne.s32.totalorder %s268_s2, %s176_s22  ;;  %p180_p6 = scmp.lt.u32.totalorder %s176_s22, %s268_s2 }
 0x224   :  { %p182_p7 = pnand %p180_p6, %p177_p5 }
 0x226   :  { %185 = shalt.err (!%p182_p7)
}
 0x227   :  { %140 = dma.vmem_to_hbm [thread:$0]  %s138_s17, 128, %s268_s2, [#allocation3]  }
 0x228   :  { %186 = dma.done.wait [#allocation3], 128  }
 0x229   :  { %187 = vsyncadd [#allocation3], 4294967168 }
 0x22a   :  { %144 = vsyncpa [#allocation3], 1 }

</bundles_post_ra>
